<compile_context>
chip_gen: v7x
topology: tpu7x:2x2x1
jax: 0.10.0
libtpu: 0.0.40
codegen_flags: <defaults>
</compile_context>

<pallas_src>
import functools
import math

import jax
import jax.numpy as jnp
from jax import lax
from jax.experimental import pallas as pl
from jax.experimental.pallas import tpu as pltpu


# --------------------------------------------------------------------------- #
# Kernel bodies
# --------------------------------------------------------------------------- #
def _attention_core(q, k, v, mask_bias, wo_ref, bo_ref, out_ref, amax_ref, n_heads):
    """Shared attention body.

    q:         (qlen, dim)  activations after the (pre-scaled) Q projection
    k, v:      (klen, dim)
    mask_bias: (1, klen) or (qlen, klen) additive mask (0 keep, -1e30 masked)
    """
    qlen, dim = q.shape
    klen = k.shape[0]
    dph = dim // n_heads

    attn_sum = jnp.zeros((qlen, klen), jnp.float32)
    ctx_parts = []
    # Heads live in contiguous lane slices of the (len, dim) projections, so the
    # per-head matmuls need no reshape/transpose (no XLU head relayout).
    for h in range(n_heads):
        lo = h * dph
        q_h = q[:, lo:lo + dph]
        k_h = k[:, lo:lo + dph]
        v_h = v[:, lo:lo + dph]
        # scores_h = q_h @ k_h^T   (1/sqrt(dph) already folded into Wq/bq)
        s = lax.dot_general(q_h, k_h, (((1,), (1,)), ((), ())),
                            preferred_element_type=jnp.float32)
        s = s + mask_bias                          # additive mask: single VPU add
        m = jnp.max(s, axis=-1, keepdims=True)
        e = jnp.exp(s - m)
        denom = jnp.sum(e, axis=-1, keepdims=True)
        # reciprocal + multiply instead of a divide; approx=True would push it
        # fully onto the EUP but is kept exact here to preserve bitwise argmax.
        w = e * pl.reciprocal(denom)
        attn_sum = attn_sum + w
        ctx_parts.append(jnp.dot(w.astype(v_h.dtype), v_h,
                                 preferred_element_type=jnp.float32))

    # (qlen, dim) context: heads concatenated back along lanes, one out-proj matmul.
    context = jnp.concatenate(ctx_parts, axis=-1).astype(q.dtype)
    out = jnp.dot(context, wo_ref[...], preferred_element_type=jnp.float32) + bo_ref[...]
    out_ref[0] = out.astype(out_ref.dtype)

    # argmax over keys of the head-summed attention ("/ n_heads" dropped: scale
    # invariant).  Lane-dense (1, 1, qlen) int32 store; ties resolve to the first
    # maximum exactly like torch.argmax / jnp.argmax.
    col = lax.broadcasted_iota(jnp.int32, (qlen, klen), 1)
    row_max = jnp.max(attn_sum, axis=-1, keepdims=True)
    amax = jnp.min(jnp.where(attn_sum == row_max, col, klen), axis=-1)
    amax_ref[...] = amax.reshape(1, 1, qlen).astype(jnp.int32)


def _mha_self_kernel(x_ref, mask_ref, w_qkv_ref, b_qkv_ref, wo_ref, bo_ref,
                     out_ref, amax_ref, *, n_heads):
    # Self-attention: single fused QKV matmul (dim -> 3*dim) for better MXU fill.
    x = x_ref[0]                                             # (qlen, dim)
    dim = x.shape[-1]
    qkv = (jnp.dot(x, w_qkv_ref[...], preferred_element_type=jnp.float32)
           + b_qkv_ref[...]).astype(x.dtype)
    q = qkv[:, 0:dim]
    k = qkv[:, dim:2 * dim]
    v = qkv[:, 2 * dim:3 * dim]
    _attention_core(q, k, v, mask_ref[0], wo_ref, bo_ref, out_ref, amax_ref, n_heads)


def _mha_cross_sharedkv_kernel(xq_ref, xkv_ref, mask_ref,
                               wq_ref, bq_ref, w_kv_ref, b_kv_ref,
                               wo_ref, bo_ref, out_ref, amax_ref, *, n_heads):
    # Cross-attention with value == key: fused (dim -> 2*dim) KV projection.
    xq = xq_ref[0]
    dim = xq.shape[-1]
    q = (jnp.dot(xq, wq_ref[...], preferred_element_type=jnp.float32)
         + bq_ref[...]).astype(xq.dtype)
    kv = (jnp.dot(xkv_ref[0], w_kv_ref[...], preferred_element_type=jnp.float32)
          + b_kv_ref[...]).astype(xq.dtype)
    k = kv[:, 0:dim]
    v = kv[:, dim:2 * dim]
    _attention_core(q, k, v, mask_ref[0], wo_ref, bo_ref, out_ref, amax_ref, n_heads)


def _mha_cross_kernel(xq_ref, xk_ref, xv_ref, mask_ref,
                      wq_ref, bq_ref, wk_ref, bk_ref, wv_ref, bv_ref,
                      wo_ref, bo_ref, out_ref, amax_ref, *, n_heads):
    # General cross-attention: key and value are different tensors.
    xq = xq_ref[0]
    q = (jnp.dot(xq, wq_ref[...], preferred_element_type=jnp.float32)
         + bq_ref[...]).astype(xq.dtype)
    k = (jnp.dot(xk_ref[0], wk_ref[...], preferred_element_type=jnp.float32)
         + bk_ref[...]).astype(xq.dtype)
    v = (jnp.dot(xv_ref[0], wv_ref[...], preferred_element_type=jnp.float32)
         + bv_ref[...]).astype(xq.dtype)
    _attention_core(q, k, v, mask_ref[0], wo_ref, bo_ref, out_ref, amax_ref, n_heads)


# --------------------------------------------------------------------------- #
# Host-side wrapper
# --------------------------------------------------------------------------- #
def _mask_bias(mask, bs, klen):
    """Additive mask bias: 0 where kept, -1e30 where mask == 0."""
    if mask is None:
        return jnp.zeros((bs, 1, klen), jnp.float32)
    bias = jnp.where(mask == 0, jnp.float32(-1e30), jnp.float32(0.0)).astype(jnp.float32)
    if mask.ndim == 3:
        return bias                     # (bs, qlen, klen)
    return bias[:, None, :]             # (bs, 1, klen): broadcast over qlen in-kernel


def multi_head_attention(query, key=None, value=None, mask=None, *, params, n_heads):
    """Pallas implementation of MultiHeadAttention.forward (eval mode).

    Returns (out, attn_scores_max) matching the PyTorch module.
    """
    bs, qlen, dim = query.shape
    assert dim % n_heads == 0
    dph = dim // n_heads
    scale = 1.0 / math.sqrt(dph)

    # Pre-transpose weights to (in, out); fold the 1/sqrt(dph) scaling into Wq/bq.
    # (In a real model this prep happens once at parameter-load time.)
    wq_t = params['wq'].T * scale
    bq_s = params['bq'] * scale
    wk_t, wv_t, wo_t = params['wk'].T, params['wv'].T, params['wo'].T
    bk, bv, bo = params['bk'], params['bv'], params['bo']

    cparams = pltpu.CompilerParams(
        dimension_semantics=("parallel",),
        vmem_limit_bytes=32 * 1024 * 1024)
    # Weight/bias blocks are grid-invariant (constant index_map): DMA'd only once.
    const2d = lambda b: (0, 0)
    per_b = lambda b: (b, 0, 0)

    if key is None:
        # --------------------- self-attention (fused QKV) ---------------------
        klen = qlen
        mbias = _mask_bias(mask, bs, klen)
        mq = mbias.shape[1]
        w_qkv = jnp.concatenate([wq_t, wk_t, wv_t], axis=1)           # (dim, 3*dim)
        b_qkv = jnp.concatenate([bq_s, bk, bv]).reshape(1, 3 * dim)   # (1, 3*dim)

        out, amax = pl.pallas_call(
            functools.partial(_mha_self_kernel, n_heads=n_heads),
            out_shape=(jax.ShapeDtypeStruct((bs, qlen, dim), query.dtype),
                       jax.ShapeDtypeStruct((bs, 1, qlen), jnp.int32)),
            grid=(bs,),
            in_specs=[
                pl.BlockSpec((1, qlen, dim), per_b),
                pl.BlockSpec((1, mq, klen), per_b),
                pl.BlockSpec((dim, 3 * dim), const2d),
                pl.BlockSpec((1, 3 * dim), const2d),
                pl.BlockSpec((dim, dim), const2d),
                pl.BlockSpec((1, dim), const2d),
            ],
            out_specs=(pl.BlockSpec((1, qlen, dim), per_b),
                       pl.BlockSpec((1, 1, qlen), per_b)),
            compiler_params=cparams,
        )(query, mbias, w_qkv, b_qkv, wo_t, bo.reshape(1, dim))
        return out, amax[:, 0, :]

    # --------------------------- cross-attention ---------------------------
    shared_kv = (value is None) or (value is key)
    if value is None:
        value = key
    klen = key.shape[1]
    mbias = _mask_bias(mask, bs, klen)
    mq = mbias.shape[1]

    if shared_kv:
        # Fused (dim -> 2*dim) KV projection on the single key/value tensor.
        w_kv = jnp.concatenate([wk_t, wv_t], axis=1)             # (dim, 2*dim)
        b_kv = jnp.concatenate([bk, bv]).reshape(1, 2 * dim)     # (1, 2*dim)
        out, amax = pl.pallas_call(
            functools.partial(_mha_cross_sharedkv_kernel, n_heads=n_heads),
            out_shape=(jax.ShapeDtypeStruct((bs, qlen, dim), query.dtype),
                       jax.ShapeDtypeStruct((bs, 1, qlen), jnp.int32)),
            grid=(bs,),
            in_specs=[
                pl.BlockSpec((1, qlen, dim), per_b),
                pl.BlockSpec((1, klen, dim), per_b),
                pl.BlockSpec((1, mq, klen), per_b),
                pl.BlockSpec((dim, dim), const2d), pl.BlockSpec((1, dim), const2d),
                pl.BlockSpec((dim, 2 * dim), const2d), pl.BlockSpec((1, 2 * dim), const2d),
                pl.BlockSpec((dim, dim), const2d), pl.BlockSpec((1, dim), const2d),
            ],
            out_specs=(pl.BlockSpec((1, qlen, dim), per_b),
                       pl.BlockSpec((1, 1, qlen), per_b)),
            compiler_params=cparams,
        )(query, key, mbias,
          wq_t, bq_s.reshape(1, dim), w_kv, b_kv, wo_t, bo.reshape(1, dim))
        return out, amax[:, 0, :]

    out, amax = pl.pallas_call(
        functools.partial(_mha_cross_kernel, n_heads=n_heads),
        out_shape=(jax.ShapeDtypeStruct((bs, qlen, dim), query.dtype),
                   jax.ShapeDtypeStruct((bs, 1, qlen), jnp.int32)),
        grid=(bs,),
        in_specs=[
            pl.BlockSpec((1, qlen, dim), per_b),
            pl.BlockSpec((1, klen, dim), per_b),
            pl.BlockSpec((1, klen, dim), per_b),
            pl.BlockSpec((1, mq, klen), per_b),
            pl.BlockSpec((dim, dim), const2d), pl.BlockSpec((1, dim), const2d),
            pl.BlockSpec((dim, dim), const2d), pl.BlockSpec((1, dim), const2d),
            pl.BlockSpec((dim, dim), const2d), pl.BlockSpec((1, dim), const2d),
            pl.BlockSpec((dim, dim), const2d), pl.BlockSpec((1, dim), const2d),
        ],
        out_specs=(pl.BlockSpec((1, qlen, dim), per_b),
                   pl.BlockSpec((1, 1, qlen), per_b)),
        compiler_params=cparams,
    )(query, key, value, mbias,
      wq_t, bq_s.reshape(1, dim), wk_t, bk.reshape(1, dim),
      wv_t, bv.reshape(1, dim), wo_t, bo.reshape(1, dim))
    return out, amax[:, 0, :]


# --------------------------------------------------------------------------- #
# Pure-JAX reference mirroring the PyTorch forward (eval mode)
# --------------------------------------------------------------------------- #
def _reference_mha(query, key, value, mask, params, n_heads):
    bs, qlen, dim = query.shape
    dph = dim // n_heads
    if key is None:
        key, value = query, query
    klen = key.shape[1]

    def lin(x, w, b):
        return jnp.einsum('bld,od->blo', x, w) + b

    def shape(x):
        return jnp.transpose(x.reshape(bs, -1, n_heads, dph), (0, 2, 1, 3))

    q = shape(lin(query, params['wq'], params['bq'])) / math.sqrt(dph)
    k = shape(lin(key, params['wk'], params['bk']))
    v = shape(lin(value, params['wv'], params['bv']))
    scores = jnp.einsum('bhqd,bhkd->bhqk', q, k)
    if mask is not None:
        if mask.ndim == 3:
            m = mask.reshape(bs, 1, qlen, klen)
        else:
            m = mask.reshape(bs, 1, 1, klen)
        scores = jnp.where(m == 0, -jnp.inf, scores)
    weights = jax.nn.softmax(scores.astype(jnp.float32), axis=-1)
    context = jnp.einsum('bhqk,bhkd->bhqd', weights, v)
    context = jnp.transpose(context, (0, 2, 1, 3)).reshape(bs, qlen, dim)
    out = lin(context, params['wo'], params['bo'])
    attn_scores = jnp.sum(weights, axis=1) / n_heads
    return out, jnp.argmax(attn_scores, axis=-1).astype(jnp.int32)


if __name__ == "__main__":
    bs, qlen, dim, n_heads = 2, 8, 32, 4
    klen_cross = 16

    key0 = jax.random.PRNGKey(0)
    keys = jax.random.split(key0, 12)

    # Deterministic synthetic parameters (torch Linear shapes: W (out, in), b (out,)).
    params = {
        'wq': 0.05 * jax.random.normal(keys[0], (dim, dim), jnp.float32),
        'bq': 0.05 * jax.random.normal(keys[1], (dim,), jnp.float32),
        'wk': 0.05 * jax.random.normal(keys[2], (dim, dim), jnp.float32),
        'bk': 0.05 * jax.random.normal(keys[3], (dim,), jnp.float32),
        'wv': 0.05 * jax.random.normal(keys[4], (dim, dim), jnp.float32),
        'bv': 0.05 * jax.random.normal(keys[5], (dim,), jnp.float32),
        'wo': 0.05 * jax.random.normal(keys[6], (dim, dim), jnp.float32),
        'bo': 0.05 * jax.random.normal(keys[7], (dim,), jnp.float32),
    }

    query = jax.random.normal(keys[8], (bs, qlen, dim), jnp.float32)

    # ---- self-attention with a 2-D padding mask (bs, klen) ----
    mask2 = jnp.ones((bs, qlen), jnp.float32).at[1, -2:].set(0.0)
    out, amax = multi_head_attention(query, mask=mask2, params=params, n_heads=n_heads)
    out = jax.block_until_ready(out)
    amax = jax.block_until_ready(amax)
    ref_out, ref_amax = _reference_mha(query, None, None, mask2, params, n_heads)
    assert jnp.allclose(out, ref_out, atol=2e-4, rtol=2e-4), "self-attn output mismatch"
    assert jnp.array_equal(amax, ref_amax), "self-attn argmax mismatch"

    # ---- cross-attention (value is key -> fused KV path) with a 3-D mask ----
    kv = jax.random.normal(keys[9], (bs, klen_cross, dim), jnp.float32)
    mask3 = jnp.ones((bs, qlen, klen_cross), jnp.float32)
    mask3 = mask3.at[0, :, -3:].set(0.0).at[1, 2:5, 0].set(0.0)
    out_c, amax_c = multi_head_attention(query, kv, kv, mask3,
                                         params=params, n_heads=n_heads)
    out_c = jax.block_until_ready(out_c)
    amax_c = jax.block_until_ready(amax_c)
    ref_out_c, ref_amax_c = _reference_mha(query, kv, kv, mask3, params, n_heads)
    assert jnp.allclose(out_c, ref_out_c, atol=2e-4, rtol=2e-4), "cross-attn output mismatch"
    assert jnp.array_equal(amax_c, ref_amax_c), "cross-attn argmax mismatch"

    # ---- general cross-attention (value != key), no mask ----
    val = jax.random.normal(keys[10], (bs, klen_cross, dim), jnp.float32)
    out_g, amax_g = multi_head_attention(query, kv, val, None,
                                         params=params, n_heads=n_heads)
    out_g = jax.block_until_ready(out_g)
    amax_g = jax.block_until_ready(amax_g)
    ref_out_g, ref_amax_g = _reference_mha(query, kv, val, None, params, n_heads)
    assert jnp.allclose(out_g, ref_out_g, atol=2e-4, rtol=2e-4), "general cross output mismatch"
    assert jnp.array_equal(amax_g, ref_amax_g), "general cross argmax mismatch"

    print("KERNEL_OK")
</pallas_src>

<mosaic_0001>
module attributes {stable_mosaic.version = 11 : i64} {
  func.func @_mha_self_kernel(%arg0: i32, %arg1: memref<1x8x32xf32, #tpu.memory_space<vmem>>, %arg2: memref<1x1x8xf32, #tpu.memory_space<vmem>>, %arg3: memref<32x96xf32, #tpu.memory_space<vmem>>, %arg4: memref<1x96xf32, #tpu.memory_space<vmem>>, %arg5: memref<32x32xf32, #tpu.memory_space<vmem>>, %arg6: memref<1x32xf32, #tpu.memory_space<vmem>>, %arg7: memref<1x8x32xf32, #tpu.memory_space<vmem>>, %arg8: memref<1x1x8xi32, #tpu.memory_space<vmem>>) attributes {dimension_semantics = [#tpu.dimension_semantics<parallel>], iteration_bounds = array<i64: 2>, scalar_prefetch = 0 : i64, scratch_operands = 0 : i64, tpu.core_type = #tpu.core_type<tc>, window_params = [{transform_indices = @transform_0, window_bounds = array<i64: 1, 8, 32>}, {transform_indices = @transform_1, window_bounds = array<i64: 1, 1, 8>}, {pipeline_mode = #tpu.pipeline_mode<synchronous>, transform_indices = @transform_2, window_bounds = array<i64: 32, 96>}, {pipeline_mode = #tpu.pipeline_mode<synchronous>, transform_indices = @transform_3, window_bounds = array<i64: 1, 96>}, {pipeline_mode = #tpu.pipeline_mode<synchronous>, transform_indices = @transform_4, window_bounds = array<i64: 32, 32>}, {pipeline_mode = #tpu.pipeline_mode<synchronous>, transform_indices = @transform_5, window_bounds = array<i64: 1, 32>}, {transform_indices = @transform_6, window_bounds = array<i64: 1, 8, 32>}, {transform_indices = @transform_7, window_bounds = array<i64: 1, 1, 8>}]} {
    %c0 = arith.constant 0 : index
    %c0_0 = arith.constant 0 : index
    %c0_1 = arith.constant 0 : index
    %0 = vector.load %arg1[%c0, %c0_0, %c0_1] : memref<1x8x32xf32, #tpu.memory_space<vmem>>, vector<1x8x32xf32>
    %1 = vector.shape_cast %0 : vector<1x8x32xf32> to vector<8x32xf32>
    %c0_2 = arith.constant 0 : index
    %c0_3 = arith.constant 0 : index
    %2 = vector.load %arg3[%c0_2, %c0_3] : memref<32x96xf32, #tpu.memory_space<vmem>>, vector<32x96xf32>
    %cst = arith.constant dense<0.000000e+00> : vector<8x96xf32>
    %3 = tpu.matmul %1, %2, %cst {dimension_numbers = #tpu.dot_dimension_numbers<[1], [0], [0], [1], [0, 0, 1, 1], [], []>} : vector<8x32xf32>, vector<32x96xf32>, vector<8x96xf32> -> vector<8x96xf32>
    %c0_4 = arith.constant 0 : index
    %c0_5 = arith.constant 0 : index
    %4 = vector.load %arg4[%c0_4, %c0_5] : memref<1x96xf32, #tpu.memory_space<vmem>>, vector<1x96xf32>
    %5 = vector.broadcast %4 : vector<1x96xf32> to vector<8x96xf32>
    %6 = arith.addf %3, %5 : vector<8x96xf32>
    %7 = vector.extract_strided_slice %6 {offsets = [0, 0], sizes = [8, 32], strides = [1, 1]} : vector<8x96xf32> to vector<8x32xf32>
    %8 = vector.extract_strided_slice %6 {offsets = [0, 32], sizes = [8, 32], strides = [1, 1]} : vector<8x96xf32> to vector<8x32xf32>
    %9 = vector.extract_strided_slice %6 {offsets = [0, 64], sizes = [8, 32], strides = [1, 1]} : vector<8x96xf32> to vector<8x32xf32>
    %c0_6 = arith.constant 0 : index
    %c0_7 = arith.constant 0 : index
    %c0_8 = arith.constant 0 : index
    %10 = vector.load %arg2[%c0_6, %c0_7, %c0_8] : memref<1x1x8xf32, #tpu.memory_space<vmem>>, vector<1x1x8xf32>
    %11 = vector.shape_cast %10 : vector<1x1x8xf32> to vector<1x8xf32>
    %cst_9 = arith.constant 0.000000e+00 : f32
    %12 = vector.broadcast %cst_9 : f32 to vector<8x8xf32>
    %13 = vector.extract_strided_slice %7 {offsets = [0, 0], sizes = [8, 8], strides = [1, 1]} : vector<8x32xf32> to vector<8x8xf32>
    %14 = vector.extract_strided_slice %8 {offsets = [0, 0], sizes = [8, 8], strides = [1, 1]} : vector<8x32xf32> to vector<8x8xf32>
    %15 = vector.extract_strided_slice %9 {offsets = [0, 0], sizes = [8, 8], strides = [1, 1]} : vector<8x32xf32> to vector<8x8xf32>
    %cst_10 = arith.constant dense<0.000000e+00> : vector<8x8xf32>
    %16 = tpu.matmul %13, %14, %cst_10 {dimension_numbers = #tpu.dot_dimension_numbers<[1], [1], [0], [0], [0, 0, 1, 0], [], []>} : vector<8x8xf32>, vector<8x8xf32>, vector<8x8xf32> -> vector<8x8xf32>
    %17 = vector.broadcast %11 : vector<1x8xf32> to vector<8x8xf32>
    %18 = arith.addf %16, %17 : vector<8x8xf32>
    %cst_11 = arith.constant dense<0xFF800000> : vector<8xf32>
    %19 = vector.multi_reduction <maximumf>, %18, %cst_11 [1] : vector<8x8xf32> to vector<8xf32>
    %20 = vector.shape_cast %19 : vector<8xf32> to vector<8x1xf32>
    %21 = vector.broadcast %20 : vector<8x1xf32> to vector<8x8xf32>
    %22 = arith.subf %18, %21 : vector<8x8xf32>
    %23 = math.exp %22 : vector<8x8xf32>
    %cst_12 = arith.constant dense<0.000000e+00> : vector<8xf32>
    %24 = vector.multi_reduction <add>, %23, %cst_12 [1] : vector<8x8xf32> to vector<8xf32>
    %25 = vector.shape_cast %24 : vector<8xf32> to vector<8x1xf32>
    %26 = tpu.reciprocal %25 : vector<8x1xf32> -> vector<8x1xf32>
    %27 = vector.broadcast %26 : vector<8x1xf32> to vector<8x8xf32>
    %28 = arith.mulf %23, %27 : vector<8x8xf32>
    %29 = arith.addf %12, %28 : vector<8x8xf32>
    %cst_13 = arith.constant dense<0.000000e+00> : vector<8x8xf32>
    %30 = tpu.matmul %28, %15, %cst_13 {dimension_numbers = #tpu.dot_dimension_numbers<[1], [0], [0], [1], [0, 0, 1, 1], [], []>} : vector<8x8xf32>, vector<8x8xf32>, vector<8x8xf32> -> vector<8x8xf32>
    %31 = vector.extract_strided_slice %7 {offsets = [0, 8], sizes = [8, 8], strides = [1, 1]} : vector<8x32xf32> to vector<8x8xf32>
    %32 = vector.extract_strided_slice %8 {offsets = [0, 8], sizes = [8, 8], strides = [1, 1]} : vector<8x32xf32> to vector<8x8xf32>
    %33 = vector.extract_strided_slice %9 {offsets = [0, 8], sizes = [8, 8], strides = [1, 1]} : vector<8x32xf32> to vector<8x8xf32>
    %cst_14 = arith.constant dense<0.000000e+00> : vector<8x8xf32>
    %34 = tpu.matmul %31, %32, %cst_14 {dimension_numbers = #tpu.dot_dimension_numbers<[1], [1], [0], [0], [0, 0, 1, 0], [], []>} : vector<8x8xf32>, vector<8x8xf32>, vector<8x8xf32> -> vector<8x8xf32>
    %35 = vector.broadcast %11 : vector<1x8xf32> to vector<8x8xf32>
    %36 = arith.addf %34, %35 : vector<8x8xf32>
    %cst_15 = arith.constant dense<0xFF800000> : vector<8xf32>
    %37 = vector.multi_reduction <maximumf>, %36, %cst_15 [1] : vector<8x8xf32> to vector<8xf32>
    %38 = vector.shape_cast %37 : vector<8xf32> to vector<8x1xf32>
    %39 = vector.broadcast %38 : vector<8x1xf32> to vector<8x8xf32>
    %40 = arith.subf %36, %39 : vector<8x8xf32>
    %41 = math.exp %40 : vector<8x8xf32>
    %cst_16 = arith.constant dense<0.000000e+00> : vector<8xf32>
    %42 = vector.multi_reduction <add>, %41, %cst_16 [1] : vector<8x8xf32> to vector<8xf32>
    %43 = vector.shape_cast %42 : vector<8xf32> to vector<8x1xf32>
    %44 = tpu.reciprocal %43 : vector<8x1xf32> -> vector<8x1xf32>
    %45 = vector.broadcast %44 : vector<8x1xf32> to vector<8x8xf32>
    %46 = arith.mulf %41, %45 : vector<8x8xf32>
    %47 = arith.addf %29, %46 : vector<8x8xf32>
    %cst_17 = arith.constant dense<0.000000e+00> : vector<8x8xf32>
    %48 = tpu.matmul %46, %33, %cst_17 {dimension_numbers = #tpu.dot_dimension_numbers<[1], [0], [0], [1], [0, 0, 1, 1], [], []>} : vector<8x8xf32>, vector<8x8xf32>, vector<8x8xf32> -> vector<8x8xf32>
    %49 = vector.extract_strided_slice %7 {offsets = [0, 16], sizes = [8, 8], strides = [1, 1]} : vector<8x32xf32> to vector<8x8xf32>
    %50 = vector.extract_strided_slice %8 {offsets = [0, 16], sizes = [8, 8], strides = [1, 1]} : vector<8x32xf32> to vector<8x8xf32>
    %51 = vector.extract_strided_slice %9 {offsets = [0, 16], sizes = [8, 8], strides = [1, 1]} : vector<8x32xf32> to vector<8x8xf32>
    %cst_18 = arith.constant dense<0.000000e+00> : vector<8x8xf32>
    %52 = tpu.matmul %49, %50, %cst_18 {dimension_numbers = #tpu.dot_dimension_numbers<[1], [1], [0], [0], [0, 0, 1, 0], [], []>} : vector<8x8xf32>, vector<8x8xf32>, vector<8x8xf32> -> vector<8x8xf32>
    %53 = vector.broadcast %11 : vector<1x8xf32> to vector<8x8xf32>
    %54 = arith.addf %52, %53 : vector<8x8xf32>
    %cst_19 = arith.constant dense<0xFF800000> : vector<8xf32>
    %55 = vector.multi_reduction <maximumf>, %54, %cst_19 [1] : vector<8x8xf32> to vector<8xf32>
    %56 = vector.shape_cast %55 : vector<8xf32> to vector<8x1xf32>
    %57 = vector.broadcast %56 : vector<8x1xf32> to vector<8x8xf32>
    %58 = arith.subf %54, %57 : vector<8x8xf32>
    %59 = math.exp %58 : vector<8x8xf32>
    %cst_20 = arith.constant dense<0.000000e+00> : vector<8xf32>
    %60 = vector.multi_reduction <add>, %59, %cst_20 [1] : vector<8x8xf32> to vector<8xf32>
    %61 = vector.shape_cast %60 : vector<8xf32> to vector<8x1xf32>
    %62 = tpu.reciprocal %61 : vector<8x1xf32> -> vector<8x1xf32>
    %63 = vector.broadcast %62 : vector<8x1xf32> to vector<8x8xf32>
    %64 = arith.mulf %59, %63 : vector<8x8xf32>
    %65 = arith.addf %47, %64 : vector<8x8xf32>
    %cst_21 = arith.constant dense<0.000000e+00> : vector<8x8xf32>
    %66 = tpu.matmul %64, %51, %cst_21 {dimension_numbers = #tpu.dot_dimension_numbers<[1], [0], [0], [1], [0, 0, 1, 1], [], []>} : vector<8x8xf32>, vector<8x8xf32>, vector<8x8xf32> -> vector<8x8xf32>
    %67 = vector.extract_strided_slice %7 {offsets = [0, 24], sizes = [8, 8], strides = [1, 1]} : vector<8x32xf32> to vector<8x8xf32>
    %68 = vector.extract_strided_slice %8 {offsets = [0, 24], sizes = [8, 8], strides = [1, 1]} : vector<8x32xf32> to vector<8x8xf32>
    %69 = vector.extract_strided_slice %9 {offsets = [0, 24], sizes = [8, 8], strides = [1, 1]} : vector<8x32xf32> to vector<8x8xf32>
    %cst_22 = arith.constant dense<0.000000e+00> : vector<8x8xf32>
    %70 = tpu.matmul %67, %68, %cst_22 {dimension_numbers = #tpu.dot_dimension_numbers<[1], [1], [0], [0], [0, 0, 1, 0], [], []>} : vector<8x8xf32>, vector<8x8xf32>, vector<8x8xf32> -> vector<8x8xf32>
    %71 = vector.broadcast %11 : vector<1x8xf32> to vector<8x8xf32>
    %72 = arith.addf %70, %71 : vector<8x8xf32>
    %cst_23 = arith.constant dense<0xFF800000> : vector<8xf32>
    %73 = vector.multi_reduction <maximumf>, %72, %cst_23 [1] : vector<8x8xf32> to vector<8xf32>
    %74 = vector.shape_cast %73 : vector<8xf32> to vector<8x1xf32>
    %75 = vector.broadcast %74 : vector<8x1xf32> to vector<8x8xf32>
    %76 = arith.subf %72, %75 : vector<8x8xf32>
    %77 = math.exp %76 : vector<8x8xf32>
    %cst_24 = arith.constant dense<0.000000e+00> : vector<8xf32>
    %78 = vector.multi_reduction <add>, %77, %cst_24 [1] : vector<8x8xf32> to vector<8xf32>
    %79 = vector.shape_cast %78 : vector<8xf32> to vector<8x1xf32>
    %80 = tpu.reciprocal %79 : vector<8x1xf32> -> vector<8x1xf32>
    %81 = vector.broadcast %80 : vector<8x1xf32> to vector<8x8xf32>
    %82 = arith.mulf %77, %81 : vector<8x8xf32>
    %83 = arith.addf %65, %82 : vector<8x8xf32>
    %cst_25 = arith.constant dense<0.000000e+00> : vector<8x8xf32>
    %84 = tpu.matmul %82, %69, %cst_25 {dimension_numbers = #tpu.dot_dimension_numbers<[1], [0], [0], [1], [0, 0, 1, 1], [], []>} : vector<8x8xf32>, vector<8x8xf32>, vector<8x8xf32> -> vector<8x8xf32>
    %85 = tpu.concatenate %30, %48, %66, %84 in 1 : vector<8x8xf32>, vector<8x8xf32>, vector<8x8xf32>, vector<8x8xf32> -> vector<8x32xf32>
    %c0_26 = arith.constant 0 : index
    %c0_27 = arith.constant 0 : index
    %86 = vector.load %arg5[%c0_26, %c0_27] : memref<32x32xf32, #tpu.memory_space<vmem>>, vector<32x32xf32>
    %cst_28 = arith.constant dense<0.000000e+00> : vector<8x32xf32>
    %87 = tpu.matmul %85, %86, %cst_28 {dimension_numbers = #tpu.dot_dimension_numbers<[1], [0], [0], [1], [0, 0, 1, 1], [], []>} : vector<8x32xf32>, vector<32x32xf32>, vector<8x32xf32> -> vector<8x32xf32>
    %c0_29 = arith.constant 0 : index
    %c0_30 = arith.constant 0 : index
    %88 = vector.load %arg6[%c0_29, %c0_30] : memref<1x32xf32, #tpu.memory_space<vmem>>, vector<1x32xf32>
    %89 = vector.broadcast %88 : vector<1x32xf32> to vector<8x32xf32>
    %90 = arith.addf %87, %89 : vector<8x32xf32>
    %c0_31 = arith.constant 0 : index
    %c0_32 = arith.constant 0 : index
    %c0_33 = arith.constant 0 : index
    %91 = vector.load %arg7[%c0_31, %c0_32, %c0_33] : memref<1x8x32xf32, #tpu.memory_space<vmem>>, vector<1x8x32xf32>
    %92 = vector.shape_cast %91 : vector<1x8x32xf32> to vector<8x32xf32>
    %93 = vector.shape_cast %90 : vector<8x32xf32> to vector<1x8x32xf32>
    tpu.vector_store %arg7[%c0_31, %c0_32, %c0_33], %93 {strides = array<i32>} : memref<1x8x32xf32, #tpu.memory_space<vmem>>, vector<1x8x32xf32>,
    %94 = tpu.iota {dimensions = array<i32: 1>} : vector<8x8xi32>
    %cst_34 = arith.constant dense<0xFF800000> : vector<8xf32>
    %95 = vector.multi_reduction <maximumf>, %83, %cst_34 [1] : vector<8x8xf32> to vector<8xf32>
    %96 = vector.shape_cast %95 : vector<8xf32> to vector<8x1xf32>
    %97 = vector.broadcast %96 : vector<8x1xf32> to vector<8x8xf32>
    %98 = arith.cmpf oeq, %83, %97 : vector<8x8xf32>
    %c8_i32 = arith.constant 8 : i32
    %99 = vector.broadcast %c8_i32 : i32 to vector<8x8xi32>
    %100 = arith.select %98, %94, %99 : vector<8x8xi1>, vector<8x8xi32>
    %cst_35 = arith.constant dense<2147483647> : vector<8xi32>
    %101 = vector.multi_reduction <minsi>, %100, %cst_35 [1] : vector<8x8xi32> to vector<8xi32>
    %102 = vector.shape_cast %101 : vector<8xi32> to vector<1x1x8xi32>
    %c0_36 = arith.constant 0 : index
    %c0_37 = arith.constant 0 : index
    %c0_38 = arith.constant 0 : index
    %103 = vector.load %arg8[%c0_36, %c0_37, %c0_38] : memref<1x1x8xi32, #tpu.memory_space<vmem>>, vector<1x1x8xi32>
    tpu.vector_store %arg8[%c0_36, %c0_37, %c0_38], %102 {strides = array<i32>} : memref<1x1x8xi32, #tpu.memory_space<vmem>>, vector<1x1x8xi32>,
    return
  }
  func.func @transform_0(%arg0: i32) -> (i32, i32, i32) {
    %c0_i32 = arith.constant 0 : i32
    %c0_i32_0 = arith.constant 0 : i32
    %c0_i32_1 = arith.constant 0 : i32
    return %arg0, %c0_i32, %c0_i32_0 : i32, i32, i32
  }
  func.func @transform_1(%arg0: i32) -> (i32, i32, i32) {
    %c0_i32 = arith.constant 0 : i32
    %c0_i32_0 = arith.constant 0 : i32
    %c0_i32_1 = arith.constant 0 : i32
    return %arg0, %c0_i32, %c0_i32_0 : i32, i32, i32
  }
  func.func @transform_2(%arg0: i32) -> (i32, i32) {
    %c0_i32 = arith.constant 0 : i32
    %c0_i32_0 = arith.constant 0 : i32
    %c0_i32_1 = arith.constant 0 : i32
    return %c0_i32, %c0_i32_0 : i32, i32
  }
  func.func @transform_3(%arg0: i32) -> (i32, i32) {
    %c0_i32 = arith.constant 0 : i32
    %c0_i32_0 = arith.constant 0 : i32
    %c0_i32_1 = arith.constant 0 : i32
    return %c0_i32, %c0_i32_0 : i32, i32
  }
  func.func @transform_4(%arg0: i32) -> (i32, i32) {
    %c0_i32 = arith.constant 0 : i32
    %c0_i32_0 = arith.constant 0 : i32
    %c0_i32_1 = arith.constant 0 : i32
    return %c0_i32, %c0_i32_0 : i32, i32
  }
  func.func @transform_5(%arg0: i32) -> (i32, i32) {
    %c0_i32 = arith.constant 0 : i32
    %c0_i32_0 = arith.constant 0 : i32
    %c0_i32_1 = arith.constant 0 : i32
    return %c0_i32, %c0_i32_0 : i32, i32
  }
  func.func @transform_6(%arg0: i32) -> (i32, i32, i32) {
    %c0_i32 = arith.constant 0 : i32
    %c0_i32_0 = arith.constant 0 : i32
    %c0_i32_1 = arith.constant 0 : i32
    return %arg0, %c0_i32, %c0_i32_0 : i32, i32, i32
  }
  func.func @transform_7(%arg0: i32) -> (i32, i32, i32) {
    %c0_i32 = arith.constant 0 : i32
    %c0_i32_0 = arith.constant 0 : i32
    %c0_i32_1 = arith.constant 0 : i32
    return %arg0, %c0_i32, %c0_i32_0 : i32, i32, i32
  }
}

</mosaic_0001>

<bundles_post_ra>
// kernel: tpu_custom_call.1
= control target key start
LH: loop header
LB: loop body
LE: loop exit
PB: predicated region body
PF: predicated region fallthrough
CT: control target
= control target key end

     0   :  { %13 = vsyncpa [#allocation3], 0  ;;  %s2238_s0 = inlined_call_operand.hbm [shape: f32[2,8,32], index: 0, kind: input, shape index: {}]   ;;  %s2239_s1 = inlined_call_operand.vmem [shape: f32[2,1,8], index: 1, kind: input, shape index: {}]   ;;  %s2240_s2 = inlined_call_operand.hbm [shape: f32[32,96], index: 2, kind: input, shape index: {}]   ;;  %s2241_s3 = inlined_call_operand.vmem [shape: f32[1,96], index: 3, kind: input, shape index: {}]   ;;  %s2242_s4 = inlined_call_operand.hbm [shape: f32[32,32], index: 4, kind: input, shape index: {}]   ;;  %s2243_s5 = inlined_call_operand.vmem [shape: f32[1,32], index: 5, kind: input, shape index: {}]   ;;  %s2244_s6 = inlined_call_operand.hbm [shape: f32[2,8,32], index: 6, kind: output, shape index: {0}]   ;;  %s2245_s7 = inlined_call_operand.hbm [shape: s32[2,1,8], index: 7, kind: output, shape index: {1}]  }
   0x1   :  { %15 = vsyncpa [#allocation3 + $0x1], 0 }
   0x2   :  { %16 = vsyncpa [#allocation6], 0 }
   0x3   :  { %17 = vsyncpa [#allocation4], 0 }
   0x4   :  { %19 = vsyncpa [#allocation4 + $0x1], 0 }
   0x5   :  { %20 = vsyncpa [#allocation10], 0 }
   0x6   :  { %22 = vsyncpa [#allocation10 + $0x1], 0  ;;  %s1886_s24 = smov 0   ;;  %s1888_s25 = smov 0  }
   0x7   :  { %s1890_s26 = smov 0   ;;  %s1892_s27 = smov 0  }
   0x8 LB: > { %s1907_s28 = sadd.s32 4294967295, %s1820_s27   ;;  %s1391_s29 = sadd.s32 4294967294, %s1820_s27   ;;  %s1820_s27 = sphi %s1892_s27, %s2265_s27   ;;  %s1816_s26 = sphi %s1890_s26, %s2264_s26   ;;  %s1812_s25 = sphi %s1888_s25, %s2263_s25   ;;  %s1808_s24 = sphi %s1886_s24, %s2262_s24  }
   0x9   : > { %p48_p0 = scmp.ne.s32.totalorder %s1812_s25, %s1808_s24  ;;  %p2246_p1 = scmp.eq.s32.totalorder %s1907_s28, 0 }
   0xa   : > { %p188_p3 = scmp.eq.s32.totalorder %s1391_s29, 1  ;;  %p1392_p5 = scmp.ge.s32.totalorder %s1820_s27, 1 }
   0xb   : > { %p1916_p4 = por %p2246_p1, %p48_p0  ;;  %p221_p7 = scmp.lt.s32.totalorder %s1820_s27, 3 }
   0xc   : > { %p1921_p6 = por %p188_p3, %p48_p0  ;;  %s1822_s10 = smov [#allocation5]  }
   0xd   : > { %s2249_s30 = scalar_select %p1916_p4, 1, 0 }
   0xe   : > { %s2250_s8 = scalar_select %p1921_p6, 1, 0 }
   0xf   : > { %p1926_p8 = pnand %p1392_p5, %p221_p7  ;;  %s233_s11 = sshll.u32 %s1822_s10, 4  ;;  %s1930_s11 = int_to_ptr.vmem [resolvable:$true] %s233_s11 }
  0x10   : > { %s1823_s13 = smov [#allocation7]   ;;  %s1632_s17 = scalar_lea.hbm %s2240_s2, 512 }
  0x11   : > { %p1539_p9 = pneg %p1926_p8  ;;  %s249_s14 = sshll.u32 %s1823_s13, 4  ;;  %s1941_s14 = int_to_ptr.vmem [resolvable:$true] %s249_s14 }
  0x12   : > { %p1633_p12 = scmp.ne.s32.totalorder %s2240_s2, %s1632_s17  ;;  %p1639_p5 = scmp.lt.u32.totalorder %s1632_s17, %s2240_s2 }
  0x13   : > { %p1937_p11 = pnand %p1539_p9, %p2246_p1 }
  0x15   : > { %p1634_p13 = pneg %p1937_p11 }
  0x17   : > { %p1635_p0 = pnand %p1634_p13, %p1633_p12 }
  0x19   : > { %p1636_p3 = pneg %p1635_p0 }
  0x1b   : > { %p1641_p7 = pnand %p1639_p5, %p1636_p3 }
  0x1d   : > { %1644 = shalt.err (!%p1641_p7)
}
  0x1e   : > { %s1645_s22 = scalar_lea.vmem %s1930_s11, 512  ;;  %p1653_p2 = scmp.lt.s32.totalorder %s1930_s11, %s1930_s11 }
  0x1f   : > { %p1646_p9 = scmp.ne.s32.totalorder %s1930_s11, %s1645_s22  ;;  %p1654_p12 = scmp.lt.s32.totalorder %s1645_s22, %s1645_s22 }
  0x21   : > { %p1648_p10 = pnand %p1646_p9, %p1634_p13  ;;  %p1655_p0 = por %p1654_p12, %p1653_p2 }
  0x23   : > { %p1649_p1 = pneg %p1648_p10 }
  0x25   : > { %p1656_p6 = pnand %p1655_p0, %p1649_p1 }
  0x27   : > { %1659 = shalt.err (!%p1656_p6)
}
  0x28   : > { %s1824_s23 = smov 128   ;;  %s1825_s29 = smov 8  }
  0x29   : > { %1542 = dma.hbm_to_vmem [thread:$0]  (!%p1937_p11), %s2240_s2, 512, %s1930_s11, [#allocation6], %s1824_s23, %s1824_s23, %s1825_s29  }
  0x2a   : > { %s1660_s17 = scalar_lea.hbm %s2242_s4, 512 }
  0x2b   : > { %p1661_p2 = scmp.ne.s32.totalorder %s2242_s4, %s1660_s17  ;;  %p1667_p10 = scmp.lt.u32.totalorder %s1660_s17, %s2242_s4 }
  0x2d   : > { %p1663_p1 = pnand %p1661_p2, %p1634_p13 }
  0x2f   : > { %p1664_p6 = pneg %p1663_p1 }
  0x31   : > { %p1669_p3 = pnand %p1667_p10, %p1664_p6 }
  0x33   : > { %1672 = shalt.err (!%p1669_p3)
}
  0x34   : > { %s1673_s11 = scalar_lea.vmem %s1941_s14, 512  ;;  %p1681_p12 = scmp.lt.s32.totalorder %s1941_s14, %s1941_s14 }
  0x35   : > { %p1674_p5 = scmp.ne.s32.totalorder %s1941_s14, %s1673_s11  ;;  %p1682_p0 = scmp.lt.s32.totalorder %s1673_s11, %s1673_s11 }
  0x37   : > { %p1676_p7 = pnand %p1674_p5, %p1634_p13  ;;  %p1683_p2 = por %p1682_p0, %p1681_p12 }
  0x39   : > { %p1677_p9 = pneg %p1676_p7 }
  0x3b   : > { %p1684_p1 = pnand %p1683_p2, %p1677_p9 }
  0x3d   : > { %1687 = shalt.err (!%p1684_p1)
}
  0x3e   : > { %1545 = dma.hbm_to_vmem [thread:$0]  (!%p1937_p11), %s2242_s4, 512, %s1941_s14, [#allocation6], %s1824_s23, %s1824_s23, %s1825_s29  }
  0x3f   : > { %s1996_s13 = sadd.s32 1, %s1820_s27   ;;  %s35_s12 = sadd.s32 1, %s1816_s26 }
  0x40   : > { %s32_s15 = ssub.s32 %s1820_s27, %s1996_s13  ;;  %p42_p13 = scmp.ne.s32.totalorder %s1816_s26, %s1812_s25 }
  0x41   : > { %p33_p6 = scmp.eq.s32.totalorder %s32_s15, 0  ;;  %p43_p10 = scmp.eq.s32.totalorder %s1820_s27, 0 }
  0x42   : > { %p2253_p3 = scmp.eq.s32.totalorder %s1907_s28, 1  ;;  %p1559_p7 = scmp.lt.s32.totalorder %s1820_s27, 2 }
  0x43   : > { %s2012_s17 = scalar_select %p33_p6, %s1816_s26, %s35_s12  }
  0x44   : > { %p2006_p5 = por %p2253_p3, %p42_p13  ;;  %p44_p9 = por %p43_p10, %p42_p13 }
  0x45   : > { %s266_s18 = sand.u32 1, %s1816_s26   ;;  %s1397_s14 = sshll.u32 %s1820_s27, 7 }
  0x46   : > { %s2254_s16 = scalar_select %p2006_p5, 1, 0 }
  0x47   : > { %s1396_s19 = sshll.u32 %s266_s18, 3  ;;  %s2019_s20 = scalar_lea.hbm %s2238_s0, %s1397_s14 }
  0x48   : > { %s270_s21 = scalar_lea.vmem [#allocation2], %s1396_s19  ;;  %p2023_p11 = pnand %p1559_p7, %p44_p9 }
  0x49   : > { %s277_s11 = sshll.u32 %s270_s21, 4  ;;  %s267_s10 = scalar_lea.sflag [#allocation3], %s266_s18  ;;  %s2021_s11 = int_to_ptr.vmem [resolvable:$true] %s277_s11 }
  0x4a   : > { %s1688_s12 = scalar_lea.hbm %s2019_s20, 128  ;;  %p1690_p0 = pneg %p2023_p11 }
  0x4b   : > { %p1689_p12 = scmp.ne.s32.totalorder %s2019_s20, %s1688_s12  ;;  %s1693_s14 = scalar_lea.hbm %s2238_s0, 256 }
  0x4c   : > { %p1694_p13 = scmp.lt.u32.totalorder %s2019_s20, %s2238_s0  ;;  %p1695_p6 = scmp.lt.u32.totalorder %s1693_s14, %s1688_s12 }
  0x4d   : > { %p1691_p2 = pnand %p1690_p0, %p1689_p12  ;;  %p1697_p3 = scmp.lt.u32.totalorder %s1688_s12, %s2019_s20 }
  0x4e   : > { %p1696_p10 = por %p1695_p6, %p1694_p13 }
  0x4f   : > { %p1692_p1 = pneg %p1691_p2 }
  0x50   : > { %p1698_p7 = por %p1697_p3, %p1696_p10 }
  0x52   : > { %p1699_p9 = pnand %p1698_p7, %p1692_p1 }
  0x54   : > { %1702 = shalt.err (!%p1699_p9)
}
  0x55   : > { %s1703_s18 = scalar_lea.vmem %s2021_s11, 128  ;;  %s1826_s21 = smov [#allocation2]  }
  0x56   : > { %p1704_p12 = scmp.ne.s32.totalorder %s2021_s11, %s1703_s18  ;;  %s1708_s15 = sshll.u32 %s1826_s21, 4  ;;  %s1709_s15 = int_to_ptr.vmem [resolvable:$false] %s1708_s15 }
  0x57   : > { %s1710_s19 = scalar_lea.vmem %s1709_s15, 256  ;;  %p1711_p4 = scmp.lt.s32.totalorder %s2021_s11, %s1709_s15 }
  0x58   : > { %p1706_p2 = pnand %p1704_p12, %p1690_p0  ;;  %p1712_p13 = scmp.lt.s32.totalorder %s1710_s19, %s1703_s18 }
  0x5a   : > { %p1707_p5 = pneg %p1706_p2  ;;  %p1713_p6 = por %p1712_p13, %p1711_p4 }
  0x5c   : > { %p1714_p10 = pnand %p1713_p6, %p1707_p5 }
  0x5e   : > { %1717 = shalt.err (!%p1714_p10)
}
  0x5f   : > { %1549 = dma.hbm_to_vmem [thread:$0]  (!%p2023_p11), %s2019_s20, 128, %s2021_s11, %s267_s10  }
  0x60   : > { %292 = sbr.rel (%p1926_p8) target bundleno = 2251 (0x8cb), region = 44  ;;  %s2055_s12 = sand.u32 (!%p1926_p8), 1, %s1812_s25  }
  0x61   : > { %s1399_s14 = sshll.u32 (!%p1926_p8), %s2055_s12, 3  ;;  %s295_s23 = scalar_lea.sflag (!%p1926_p8), [#allocation3], %s2055_s12 }
  0x62   : > { %s298_s29 = scalar_lea.vmem (!%p1926_p8), [#allocation2], %s1399_s14  ;;  %p2256_p4 = scmp.ne.s32.totalorder (!%p1926_p8), %s2249_s30, 0 }
  0x67   : > { %1791 = dma.done.wait (%p2256_p4), %s295_s23, 128  }
  0x68   : > { %1793 = vsyncadd (%p2256_p4), %s295_s23, 4294967168  ;;  %p2257_p5 = scmp.eq.s32.totalorder %s1907_s28, 0 }
  0x6a   : > { %1795 = dma.done.wait (%p2257_p5), [#allocation6], 1024   ;;  %p2258_p8 = pmov %p2257_p5 }
  0x6b   : > { %v1827_v0 = vmov 0.0|0.0   ;;  %vm1828_vm0 = vmmov 0   ;;  %v1829_v1 = vmov 0.0   ;;  %v348_v2 = vld [vmem:[#allocation5] sm:$0xff]  ;;  %v349_v3 = vld [vmem:[#allocation5 + $0x8] sm:$0xff]  ;;  %v350_v4 = vld [vmem:[#allocation5 + $0x10] sm:$0xff] }
  0x6c   : > { %1797 = vsyncadd (%p2258_p8), [#allocation6], 4294966272  ;;  %1513 = vmatprep.subr.bf16.mxu0 %v1827_v0  ;;  %1459 = vmatprep.mubr.msk.f32.mxu0 %vm1828_vm0, %v1829_v1  ;;  %v1514_v5 = vpack.c.bf16 %v349_v3, %v348_v2  ;;  %v351_v6 = vld [vmem:[#allocation5 + $0x18] sm:$0xff]  ;;  %vm359_vm1 = vcmask 261120   ;;  %v1403_v9 = vld [vmem:[%s2241_s3] ss:$0 sm:$0xff] }
  0x6d   : > { %1462 = vmatprep.subr.mxu1 %v1829_v1  ;;  %1464 = vmatprep.mubr.msk.f32.mxu1 %vm1828_vm0, %v1829_v1  ;;  %v1517_v7 = vpack.c.bf16 %v351_v6, %v350_v4  ;;  %v347_v8 = vld [vmem:[%s298_s29] sm:$0xff]  ;;  %s1830_s20 = smov 64   ;;  %s1831_s11 = smov 96   ;;  %vm443_vm2 = vcmask 64512   ;;  %vm1117_vm3 = vcmask 130048   ;;  %vm1119_vm4 = vcmask 195584  }
  0x6e   : > { %1515 = vmatpush3.bf16.msra.mxu0 %v1514_v5  ;;  %s1832_s22 = smov 88   ;;  %s1833_s10 = smov 120  }
  0x6f   : > { %1516 = vmatprep.subr.bf16.mxu0 %v1827_v0  ;;  %s1834_s18 = smov 80   ;;  %p344_p11 = scmp.lt.s32.totalorder %s1907_s28, 1 }
  0x70   : > { %s1835_s29 = smov 72   ;;  %s1836_s30 = smov 112  }
  0x71   : > { %s345_s21 = scalar_select %p344_p11, %s1907_s28, 1 }
  0x72   : > { %1518 = vmatpush3.bf16.msra.mxu0 %v1517_v7  ;;  %s1837_s9 = smov 104   ;;  %p2259_p1 = scmp.ne.s32.totalorder %s2254_s16, 0 }
  0x73   : > { %1482 = vmatprep.subr.mxu0 %v1829_v1  ;;  %s346_s23 = scalar_lea.vmem %s2239_s1, %s345_s21  ;;  %s1843_s21 = smov 24  }
  0x74   : > { %v1405_v18 = vld [vmem:[%s346_s23] ss:$0 sm:$0xff]  ;;  %s337_s23 = scalar_lea.vmem [#allocation8], %s1399_s14 }
  0x75   : > { %1460 = vmatmul.mubr.msk.f32.vlgmr.msra.gmra.mrb[0].mxu0 %vm359_vm1, %v347_v8 }
  0x76   : > { %1484 = vmatprep.mubr.msk.f32.mxu0 %vm1828_vm0, %v1829_v1 }
 0x148   : > { %v429_v10 = vpop.f32.mrb[0].mxu0 }
 0x149   : > { %v2083_v11 = vadd.f32 %v1403_v9, %v429_v10  ;;  %v1461_v12 = vpop.f32.mrb[1].mxu0 }
 0x14b   : > { %530 = vrot.lane.b32.xlu1 %v2083_v11, %s1830_s20  ;;  %441 = vrot.lane.b32.xlu0 %v2083_v11, %s1831_s11  ;;  %s1838_s20 = smov 56   ;;  %s1839_s11 = smov 48  }
 0x14f   : > { %608 = vrot.lane.b32.xlu1 %v2083_v11, %s1832_s22  ;;  %s1840_s22 = smov 40  }
 0x153   : > { %606 = vrot.lane.b32.xlu1 %v2083_v11, %s1833_s10  ;;  %s1841_s10 = smov 8  }
 0x157   : > { %774 = vrot.lane.b32.xlu1 %v2083_v11, %s1834_s18  ;;  %s1842_s18 = smov 16  }
 0x1bd   : > { %v531_v13 = vpop.permute.xlu1 %530  ;;  %v442_v14 = vpop.permute.xlu0 %441 }
 0x1be   : > { %1463 = vmatpush3.xpose.msk.msra.mxu1 %vm443_vm2, %v442_v14 }
 0x1bf   : > { %1467 = vmatprep.subr.mxu1 %v1829_v1 }
 0x1c1   : > { %v609_v15 = vpop.permute.xlu1 %608  ;;  %1465 = vmatmul.mubr.msk.f32.vlgmr.msra.gmra.mrb[0].mxu1 %vm443_vm2, %v2083_v11 }
 0x1c2   : > { %1468 = vmatpush3.msra.mxu1 %v531_v13  ;;  %1469 = vmatprep.mubr.msk.f32.mxu1 %vm1828_vm0, %v1829_v1 }
 0x1c3   : > { %1472 = vmatprep.subr.mxu1 %v1829_v1 }
 0x1c5   : > { %v607_v16 = vpop.permute.xlu1 %606 }
 0x1c9   : > { %v775_v17 = vpop.permute.xlu1 %774 }
 0x1ca   : > { %1483 = vmatpush3.xpose.msk.msra.mxu0 %vm443_vm2, %v775_v17  ;;  %v1122_v17 = vld [vmem:[#allocation7 + $0x8] sm:$0xff] }
 0x1cb   : > { %1492 = vmatprep.subr.mxu0 %v1829_v1 }
 0x294   : > { %v514_v19 = vpop.f32.mrb[0].mxu1 }
 0x295   : > { %v515_v20 = vadd.f32 %v1405_v18, %v514_v19  ;;  %v1466_v21 = vpop.f32.mrb[1].mxu1  ;;  %v1123_v19 = vld [vmem:[#allocation7 + $0x10] sm:$0xff] }
 0x297   : > { %v518_v22 = vsel %vm443_vm2, %v515_v20, -inf }
 0x298   : > { %519 = vmax.xlane.f32.xlu0 %v518_v22 }
 0x2ae   : > { %940 = vrot.lane.b32.xlu0 %v2083_v11, %s1835_s29  ;;  %s1421_s29 = sshll.u32 %s1907_s28, 7 }
 0x325   : > { %v520_v23 = vpop.xlane.xlu0 %519 }
 0x326   : > { %v521_v24 = vsub.f32 %v515_v20, %v520_v23  ;;  %v1124_v20 = vld [vmem:[#allocation7 + $0x18] sm:$0xff] }
 0x327   : > { %v1523_v21 = vpack.c.bf16 %v1124_v20, %v1123_v19 }
 0x328   : > { %v522_v25 = vmul.f32 1.442695, %v521_v24 }
 0x329   : > { %v941_v30 = vpop.permute.xlu0 %940 }
 0x32a   : > { %1616 = vpow2.f32 %v522_v25 }
 0x334   : > { %v1617_v26 = vpop.eup %1616 }
 0x335   : > { %v524_v27 = vsel %vm443_vm2, %v1617_v26, 0.0 }
 0x336   : > { %525 = vadd.xlane.f32.xlu1 %v524_v27 }
 0x347   : > { %772 = vrot.lane.b32.xlu1 %v2083_v11, %s1836_s30 }
 0x34b   : > { %938 = vrot.lane.b32.xlu1 %v2083_v11, %s1837_s9 }
 0x3c3   : > { %v526_v28 = vpop.xlane.xlu1 %525 }
 0x3c4   : > { %1618 = vrcp.f32 %v526_v28 }
 0x3c7   : > { %v773_v29 = vpop.permute.xlu1 %772 }
 0x3c8   : > { %1485 = vmatmul.mubr.msk.f32.vlgmr.msra.gmra.mrb[2].mxu0 %vm443_vm2, %v773_v29 }
 0x3c9   : > { %1493 = vmatpush3.xpose.msk.msra.mxu0 %vm443_vm2, %v941_v30  ;;  %1494 = vmatprep.mubr.msk.f32.mxu0 %vm1828_vm0, %v1829_v1 }
 0x3ca   : > { %1519 = vmatprep.subr.bf16.mxu0 %v1827_v0 }
 0x3cb   : > { %v939_v31 = vpop.permute.xlu1 %938 }
 0x3cc   : > { %1495 = vmatmul.mubr.msk.f32.vlgmr.msra.gmra.mrb[4].mxu0 %vm443_vm2, %v939_v31 }
 0x3cd   : > { %1510 = vmatprep.mubr.msk.f32.mxu0 %vm1828_vm0, %v1829_v1 }
 0x3ce   : > { %v1619_v32 = vpop.eup %1618 }
 0x3cf   : > { %v2117_v33 = vmul.f32 %v1619_v32, %v1617_v26 }
 0x3d1   : > { %1470 = vmatmul.mubr.msk.f32.vlgmr.msra.gmra.mrb[2].mxu1 %vm443_vm2, %v2117_v33 }
 0x3d2   : > { %1473 = vmatpush3.xpose.msk.msra.mxu1 %vm443_vm2, %v609_v15  ;;  %1474 = vmatprep.mubr.msk.f32.mxu1 %vm1828_vm0, %v1829_v1 }
 0x3d3   : > { %1477 = vmatprep.subr.mxu1 %v1829_v1 }
 0x3d5   : > { %1475 = vmatmul.mubr.msk.f32.vlgmr.msra.gmra.mrb[4].mxu1 %vm443_vm2, %v607_v16  ;;  %v1121_v16 = vld [vmem:[#allocation7] sm:$0xff] }
 0x3d6   : > { %1479 = vmatprep.mubr.msk.f32.mxu1 %vm1828_vm0, %v1829_v1 }
 0x49b   : > { %v846_v34 = vpop.f32.mrb[2].mxu0 }
 0x49c   : > { %v847_v35 = vadd.f32 %v1405_v18, %v846_v34  ;;  %v1486_v36 = vpop.f32.mrb[3].mxu0 }
 0x49e   : > { %v850_v37 = vsel %vm443_vm2, %v847_v35, -inf }
 0x49f   : > { %851 = vmax.xlane.f32.xlu0 %v850_v37  ;;  %v1012_v38 = vpop.f32.mrb[4].mxu0 }
 0x4a0   : > { %v1496_v39 = vpop.f32.mrb[5].mxu0  ;;  %v1013_v45 = vadd.f32 %v1405_v18, %v1012_v38 }
 0x4a2   : > { %v1016_v47 = vsel %vm443_vm2, %v1013_v45, -inf }
 0x4a4   : > { %v2129_v40 = vpop.f32.mrb[2].mxu1 }
 0x4a5   : > { %v1471_v41 = vpop.f32.mrb[3].mxu1 }
 0x4a8   : > { %v680_v42 = vpop.f32.mrb[4].mxu1 }
 0x4a9   : > { %v681_v43 = vadd.f32 %v1405_v18, %v680_v42  ;;  %v1476_v44 = vpop.f32.mrb[5].mxu1  ;;  %v1520_v18 = vpack.c.bf16 %v1122_v17, %v1121_v16 }
 0x4aa   : > { %v1418_v44 = vld [vmem:[%s2243_s5] ss:$0 sm:$0xff] }
 0x4ab   : > { %v684_v46 = vsel %vm443_vm2, %v681_v43, -inf  ;;  %1521 = vmatpush3.bf16.msra.mxu0 %v1520_v18 }
 0x4ac   : > { %685 = vmax.xlane.f32.xlu1 %v684_v46  ;;  %1522 = vmatprep.subr.bf16.mxu0 %v1827_v0 }
 0x4af   : > { %1524 = vmatpush3.bf16.msra.mxu0 %v1523_v21 }
 0x4b0   : > { %1017 = vmax.xlane.f32.xlu1 %v1016_v47 }
 0x52c   : > { %v852_v48 = vpop.xlane.xlu0 %851 }
 0x52d   : > { %v853_v49 = vsub.f32 %v847_v35, %v852_v48 }
 0x52f   : > { %v854_v50 = vmul.f32 1.442695, %v853_v49 }
 0x531   : > { %1620 = vpow2.f32 %v854_v50 }
 0x539   : > { %v686_v51 = vpop.xlane.xlu1 %685 }
 0x53a   : > { %v687_v59 = vsub.f32 %v681_v43, %v686_v51 }
 0x53b   : > { %v1621_v52 = vpop.eup %1620 }
 0x53c   : > { %v856_v53 = vsel %vm443_vm2, %v1621_v52, 0.0  ;;  %v688_v60 = vmul.f32 1.442695, %v687_v59 }
 0x53d   : > { %857 = vadd.xlane.f32.xlu1 %v856_v53  ;;  %v1018_v54 = vpop.xlane.xlu1 %1017 }
 0x53e   : > { %v1019_v55 = vsub.f32 %v1013_v45, %v1018_v54 }
 0x540   : > { %v1020_v56 = vmul.f32 1.442695, %v1019_v55 }
 0x542   : > { %1622 = vpow2.f32 %v1020_v56 }
 0x543   : > { %1624 = vpow2.f32 %v688_v60 }
 0x54c   : > { %v1623_v57 = vpop.eup %1622 }
 0x54d   : > { %v1022_v58 = vsel %vm443_vm2, %v1623_v57, 0.0  ;;  %v1625_v61 = vpop.eup %1624 }
 0x54e   : > { %696 = vrot.lane.b32.xlu1 %v2083_v11, %s1838_s20  ;;  %1023 = vadd.xlane.f32.xlu0 %v1022_v58  ;;  %v690_v62 = vsel %vm443_vm2, %v1625_v61, 0.0  ;;  %s2168_s20 = scalar_lea.hbm %s2244_s6, %s1421_s29 }
 0x564   : > { %862 = vrot.lane.b32.xlu0 %v2083_v11, %s1839_s11  ;;  %s1252_s11 = sshll.u32 %s337_s23, 4  ;;  %s1253_s11 = int_to_ptr.vmem [resolvable:$true] %s1252_s11 }
 0x572   : > { %691 = vadd.xlane.f32.xlu1 %v690_v62 }
 0x583   : > { %1028 = vrot.lane.b32.xlu1 %v2083_v11, %s1840_s22  ;;  %s1235_s22 = scalar_lea.sflag [#allocation4], %s2055_s12 }
 0x5ca   : > { %v858_v63 = vpop.xlane.xlu1 %857 }
 0x5cb   : > { %1626 = vrcp.f32 %v858_v63 }
 0x5ce   : > { %v697_v2 = vpop.permute.xlu1 %696 }
 0x5cf   : > { %1478 = vmatpush3.msra.mxu1 %v697_v2 }
 0x5d0   : > { %1487 = vmatprep.subr.mxu1 %v1829_v1 }
 0x5d5   : > { %v1627_v5 = vpop.eup %1626 }
 0x5d6   : > { %v860_v9 = vmul.f32 %v1627_v5, %v1621_v52 }
 0x5db   : > { %v1024_v3 = vpop.xlane.xlu0 %1023 }
 0x5df   : > { %v863_v10 = vpop.permute.xlu0 %862 }
 0x5ff   : > { %v692_v4 = vpop.xlane.xlu1 %691 }
 0x600   : > { %1628 = vrcp.f32 %v692_v4 }
 0x601   : > { %1630 = vrcp.f32 %v1024_v3 }
 0x603   : > { %v1029_v14 = vpop.permute.xlu1 %1028 }
 0x60a   : > { %v1629_v6 = vpop.eup %1628 }
 0x60b   : > { %v694_v7 = vmul.f32 %v1629_v6, %v1625_v61  ;;  %v1631_v8 = vpop.eup %1630 }
 0x60c   : > { %v1026_v12 = vmul.f32 %v1631_v8, %v1623_v57 }
 0x60d   : > { %1480 = vmatmul.mubr.msk.f32.vlgmr.msra.gmra.mrb[6].mxu1 %vm443_vm2, %v694_v7  ;;  %v695_v11 = vadd.f32 %v694_v7, %v2117_v33  ;;  %v1206_v33 = vlaneseq }
 0x60e   : > { %1488 = vmatpush3.msra.mxu1 %v863_v10  ;;  %1489 = vmatprep.mubr.msk.f32.mxu1 %vm1828_vm0, %v1829_v1 }
 0x60f   : > { %1497 = vmatprep.subr.mxu1 %v1829_v1  ;;  %v861_v13 = vadd.f32 %v860_v9, %v695_v11  ;;  %v2154_v34 = vand.u32 127, %v1206_v33 }
 0x611   : > { %1490 = vmatmul.mubr.msk.f32.vlgmr.msra.gmra.mrb[8].mxu1 %vm443_vm2, %v860_v9  ;;  %v1027_v15 = vadd.f32 %v1026_v12, %v861_v13 }
 0x612   : > { %1498 = vmatpush3.msra.mxu1 %v1029_v14  ;;  %1499 = vmatprep.mubr.msk.f32.mxu1 %vm1828_vm0, %v1829_v1 }
 0x613   : > { %v1208_v27 = vsel %vm443_vm2, %v1027_v15, -inf }
 0x615   : > { %1500 = vmatmul.mubr.msk.f32.vlgmr.msra.gmra.mrb[10].mxu1 %vm443_vm2, %v1026_v12 }
 0x6e0   : > { %v768_v22 = vpop.f32.mrb[6].mxu1 }
 0x6e1   : > { %1105 = vrot.lane.b32.xlu1 %v768_v22, %s1841_s10  ;;  %v1481_v23 = vpop.f32.mrb[7].mxu1  ;;  %s1718_s10 = scalar_lea.vmem %s1253_s11, 128 }
 0x6e2   : > { %p1719_p0 = scmp.ne.s32.totalorder %s1253_s11, %s1718_s10 }
 0x6e4   : > { %v934_v24 = vpop.f32.mrb[8].mxu1  ;;  %p1720_p3 = pnand %p1719_p0, %p2259_p1 }
 0x6e5   : > { %1109 = vrot.lane.b32.xlu0 %v934_v24, %s1842_s18  ;;  %v1491_v1 = vpop.f32.mrb[9].mxu1  ;;  %s1844_s18 = smov [#allocation8]  }
 0x6e6   : > { %p1721_p7 = pneg %p1720_p3 }
 0x6e8   : > { %v1100_v25 = vpop.f32.mrb[10].mxu1 }
 0x6e9   : > { %1113 = vrot.lane.b32.xlu1 %v1100_v25, %s1843_s21  ;;  %v1501_v26 = vpop.f32.mrb[11].mxu1  ;;  %s1722_s21 = sshll.u32 %s1844_s18, 4  ;;  %s1723_s21 = int_to_ptr.vmem [resolvable:$false] %s1722_s21 }
 0x6ea   : > { %s1724_s14 = scalar_lea.vmem %s1723_s21, 256  ;;  %p1725_p9 = scmp.lt.s32.totalorder %s1253_s11, %s1723_s21 }
 0x6eb   : > { %p1726_p12 = scmp.lt.s32.totalorder %s1724_s14, %s1718_s10 }
 0x6ed   : > { %p1727_p2 = por %p1726_p12, %p1725_p9 }
 0x6ef   : > { %p1728_p13 = pnand %p1727_p2, %p1721_p7 }
 0x704   : > { %1209 = vmax.xlane.f32.xlu0 %v1208_v27 }
 0x753   : > { %v1106_v0 = vpop.permute.xlu1 %1105 }
 0x754   : > { %v1116_v29 = vsel %vm443_vm2, %v2129_v40, %v1106_v0 }
 0x757   : > { %v1110_v28 = vpop.permute.xlu0 %1109 }
 0x758   : > { %v1118_v30 = vsel %vm1117_vm3, %v1116_v29, %v1110_v28 }
 0x75b   : > { %v1114_v31 = vpop.permute.xlu1 %1113 }
 0x75c   : > { %v1120_v32 = vsel %vm1119_vm4, %v1118_v30, %v1114_v31 }
 0x75d   : > { %1511 = vmatmul.mubr.msk.f32.vlgmr.msra.gmra.mrb[6].mxu0 %vm359_vm1, %v1120_v32 }
 0x791   : > { %v1210_v35 = vpop.xlane.xlu0 %1209 }
 0x792   : > { %vm1211_vm5 = vcmp.eq.f32.partialorder %v1027_v15, %v1210_v35 }
 0x793   : > { %v1212_v36 = vsel %vm1211_vm5, %v2154_v34, 8 }
 0x794   : > { %v1213_v37 = vsel %vm443_vm2, %v1212_v36, 2147483647 }
 0x795   : > { %v1215_v38 = vshra.s32 %v1213_v37, 16  ;;  %v1214_v40 = vand.u32 65535, %v1213_v37 }
 0x797   : > { %v1217_v39 = vcvt.s32.f32 %v1215_v38  ;;  %v1216_v42 = vcvt.s32.f32 %v1214_v40 }
 0x799   : > { %1218 = vmin.xlane.f32.xlu1 %v1217_v39 }
 0x826   : > { %v1219_v41 = vpop.xlane.xlu1 %1218 }
 0x827   : > { %vm1220_vm6 = vcmp.eq.f32.partialorder %v1217_v39, %v1219_v41 }
 0x828   : > { %v1221_v43 = vsel %vm1220_vm6, %v1216_v42, inf }
 0x829   : > { %1222 = vmin.xlane.f32.xlu0 %v1221_v43 }
 0x830   : > { %v1201_v45 = vpop.f32.mrb[6].mxu0 }
 0x831   : > { %v1202_v46 = vadd.f32 %v1418_v44, %v1201_v45  ;;  %v1512_v47 = vpop.f32.mrb[7].mxu0 }
 0x833   : > { %1205 = vst.msk [vmem:[%s337_s23] sm:$0xff] %vm359_vm1, %v1202_v46 }
 0x834   : > { %1731 = shalt.err (!%p1728_p13)
}
 0x835   : > { %s1732_s15 = scalar_lea.hbm %s2168_s20, 128  ;;  %s1736_s29 = scalar_lea.hbm %s2244_s6, 256 }
 0x836   : > { %p1733_p6 = scmp.ne.s32.totalorder %s2168_s20, %s1732_s15  ;;  %p1737_p5 = scmp.lt.u32.totalorder %s2168_s20, %s2244_s6 }
 0x837   : > { %p1738_p8 = scmp.lt.u32.totalorder %s1736_s29, %s1732_s15  ;;  %p1740_p0 = scmp.lt.u32.totalorder %s1732_s15, %s2168_s20 }
 0x838   : > { %p1734_p10 = pnand %p1733_p6, %p2259_p1 }
 0x839   : > { %p1739_p11 = por %p1738_p8, %p1737_p5 }
 0x83a   : > { %p1735_p4 = pneg %p1734_p10 }
 0x83b   : > { %p1741_p3 = por %p1740_p0, %p1739_p11 }
 0x83d   : > { %p1742_p7 = pnand %p1741_p3, %p1735_p4 }
 0x83f   : > { %1745 = shalt.err (!%p1742_p7)
}
 0x840   : > { %1535 = dma.vmem_to_hbm [thread:$0]  (%p2259_p1), %s1253_s11, 128, %s2168_s20, %s1235_s22   ;;  %v1229_v48 = vshrl.u32 %v1206_v33, 7  ;;  %v1225_v49 = vcvt.f32.s32 %v1219_v41  ;;  %vm1232_vm7 = vcmask 57344  }
 0x841   : > { %s1422_s10 = sshll.u32 %s1907_s28, 4  ;;  %s343_s18 = scalar_lea.vmem [#allocation9], %s2055_s12 }
 0x842   : > { %v1230_v51 = vsub.s32 %v2154_v34, %v1229_v48  ;;  %v1226_v52 = vshll.u32 %v1225_v49, 16  ;;  %s1265_s21 = sshll.u32 %s343_s18, 4  ;;  %s2194_s19 = scalar_lea.hbm %s2245_s7, %s1422_s10  ;;  %s2196_s21 = int_to_ptr.vmem [resolvable:$true] %s1265_s21 }
 0x843   : > { %s1240_s20 = scalar_lea.sflag [#allocation10], %s2055_s12  ;;  %s1746_s11 = scalar_lea.vmem %s2196_s21, 16 }
 0x844   : > { %p1747_p9 = scmp.ne.s32.totalorder %s2196_s21, %s1746_s11  ;;  %s1845_s28 = smov [#allocation9]  }
 0x845   : > { %s1750_s22 = sshll.u32 %s1845_s28, 4  ;;  %s1751_s22 = int_to_ptr.vmem [resolvable:$false] %s1750_s22 }
 0x846   : > { %p1748_p12 = pnand %p1747_p9, %p2259_p1  ;;  %s1752_s23 = scalar_lea.vmem %s1751_s22, 32 }
 0x847   : > { %p1753_p13 = scmp.lt.s32.totalorder %s2196_s21, %s1751_s22  ;;  %p1754_p6 = scmp.lt.s32.totalorder %s1752_s23, %s1746_s11 }
 0x848   : > { %p1749_p2 = pneg %p1748_p12 }
 0x849   : > { %p1755_p10 = por %p1754_p6, %p1753_p13 }
 0x84b   : > { %p1756_p4 = pnand %p1755_p10, %p1749_p2 }
 0x8b6   : > { %v1223_v50 = vpop.xlane.xlu0 %1222 }
 0x8b7   : > { %v1224_v53 = vcvt.f32.s32 %v1223_v50 }
 0x8b9   : > { %v1227_v54 = vadd.s32 %v1226_v52, %v1224_v53 }
 0x8bb   : > { %v1231_v55 = vrot.slane %v1227_v54, %v1230_v51 }
 0x8bd   : > { %1233 = vst.msk [vmem:[%s343_s18] sm:$0x1] %vm1232_vm7, %v1231_v55 }
 0x8be   : > { %1759 = shalt.err (!%p1756_p4)
}
 0x8bf   : > { %s1760_s12 = scalar_lea.hbm %s2194_s19, 16  ;;  %s1764_s9 = scalar_lea.hbm %s2245_s7, 32 }
 0x8c0   : > { %p1761_p5 = scmp.ne.s32.totalorder %s2194_s19, %s1760_s12  ;;  %p1765_p0 = scmp.lt.u32.totalorder %s2194_s19, %s2245_s7 }
 0x8c1   : > { %p1766_p3 = scmp.lt.u32.totalorder %s1764_s9, %s1760_s12  ;;  %p1768_p9 = scmp.lt.u32.totalorder %s1760_s12, %s2194_s19 }
 0x8c2   : > { %p1762_p8 = pnand %p1761_p5, %p2259_p1 }
 0x8c3   : > { %p1767_p7 = por %p1766_p3, %p1765_p0 }
 0x8c4   : > { %p1763_p11 = pneg %p1762_p8 }
 0x8c5   : > { %p1769_p12 = por %p1768_p9, %p1767_p7 }
 0x8c7   : > { %p1770_p2 = pnand %p1769_p12, %p1763_p11 }
 0x8c9   : > { %1773 = shalt.err (!%p1770_p2)
}
 0x8ca   : > { %1536 = dma.vmem_to_hbm [thread:$0]  (%p2259_p1), %s2196_s21, 16, %s2194_s19, %s1240_s20  }
 0x8cb PF: > { %s1277_s14 = sand.u32 1, %s1808_s24   ;;  %p2260_p13 = scmp.ne.s32.totalorder %s2250_s8, 0 }
 0x8cc   : > { %p2261_p6 = scmp.ge.s32.totalorder %s1820_s27, 2  ;;  %s1278_s15 = scalar_lea.sflag [#allocation4], %s1277_s14 }
 0x8ce   : > { %p1551_p10 = pnand %p2261_p6, %p2260_p13 }
 0x8d0   : > { %1799 = dma.done.wait (!%p1551_p10), %s1278_s15, 128  }
 0x8d1   : > { %1801 = vsyncadd (!%p1551_p10), %s1278_s15, 4294967168  ;;  %s1287_s11 = scalar_lea.sflag [#allocation10], %s1277_s14 }
 0x8d2   : > { %1803 = dma.done.wait (!%p1551_p10), %s1287_s11, 16  }
 0x8d3   : > { %1805 = vsyncadd (!%p1551_p10), %s1287_s11, 4294967280  ;;  %p25_p1 = scmp.ge.s32.totalorder %s1996_s13, 4   ;;  %s2262_s24 = smov %s1812_s25 }
 0x8d4   : > { %s2263_s25 = smov %s1816_s26  ;;  %s2264_s26 = smov %s2012_s17 }
 0x8d5   : > { %s2265_s27 = smov %s1996_s13  ;;  %27 = sbr.rel (!%p25_p1) target bundleno = 8 (0x8), region = 117 }
 0x8dc   :  { %1291 = vsyncpa [#allocation3], 1 }
 0x8dd   :  { %1293 = vsyncpa [#allocation3 + $0x1], 1 }
 0x8de   :  { %1294 = vsyncpa [#allocation6], 1 }
 0x8df   :  { %1295 = vsyncpa [#allocation4], 1 }
 0x8e0   :  { %1297 = vsyncpa [#allocation4 + $0x1], 1 }
 0x8e1   :  { %1298 = vsyncpa [#allocation10], 1 }
 0x8e2   :  { %1300 = vsyncpa [#allocation10 + $0x1], 1 }

</bundles_post_ra>
